<compile_context>
chip_gen: v7x
topology: tpu7x:2x2x1
jax: 0.10.0
libtpu: 0.0.40
codegen_flags: <defaults>
</compile_context>

<pallas_src>
import functools

import jax
import jax.numpy as jnp
from jax.experimental import pallas as pl
from jax.experimental.pallas import tpu as pltpu


_SMALL_BATCH_LIMIT = 256  # above this, use the tiled grid kernel


# ---------------------------------------------------------------------------
# Fused single-block kernel (small / moderate batch sizes)
# ---------------------------------------------------------------------------
def _mmd_small_kernel(s_ref, t_ref, loss_ref, *, kernel_mul, kernel_num):
    s = s_ref[...]                      # (B, D), native dtype
    t = t_ref[...]                      # (B, D)
    bsz = s.shape[0]
    n = 2 * bsz

    dims = (((1,), (1,)), ((), ()))
    # Gram blocks on the MXU, f32 accumulation (operands stay in native dtype).
    gram_ss = jax.lax.dot_general(s, s, dims, preferred_element_type=jnp.float32)
    gram_tt = jax.lax.dot_general(t, t, dims, preferred_element_type=jnp.float32)
    gram_st = jax.lax.dot_general(s, t, dims, preferred_element_type=jnp.float32)

    s32 = s.astype(jnp.float32)
    t32 = t.astype(jnp.float32)
    sq_s = jnp.sum(s32 * s32, axis=-1, keepdims=True)   # (B, 1)
    sq_t = jnp.sum(t32 * t32, axis=-1, keepdims=True)   # (B, 1)

    # Pairwise squared distances per block, clamped at 0 (cancellation guard).
    l2_ss = jnp.maximum(sq_s + jnp.transpose(sq_s) - 2.0 * gram_ss, 0.0)
    l2_tt = jnp.maximum(sq_t + jnp.transpose(sq_t) - 2.0 * gram_tt, 0.0)
    l2_st = jnp.maximum(sq_s + jnp.transpose(sq_t) - 2.0 * gram_st, 0.0)

    # Bandwidth = mean of the full N x N distance matrix over (N^2 - N);
    # the YX block is the transpose of XY, hence the factor 2.
    sum_l2 = jnp.sum(l2_ss) + jnp.sum(l2_tt) + 2.0 * jnp.sum(l2_st)
    bandwidth = sum_l2 / jnp.float32(n * n - n)
    bandwidth = bandwidth / jnp.float32(kernel_mul ** (kernel_num // 2))

    def signed_sum(e_ss, e_tt, e_st):
        # sum(XX) + sum(YY) - sum(XY) - sum(YX); sum(YX) == sum(XY).
        return jnp.sum(e_ss) + jnp.sum(e_tt) - 2.0 * jnp.sum(e_st)

    if kernel_mul == 2.0:
        # One exp per block at the widest bandwidth, then repeated squaring:
        # exp(-x / 2^k)^2 == exp(-x / 2^(k-1)).  EUP does 1 pass, VALU the rest.
        neg_inv = -1.0 / (bandwidth * jnp.float32(2.0 ** (kernel_num - 1)))
        e_ss = jnp.exp(l2_ss * neg_inv)
        e_tt = jnp.exp(l2_tt * neg_inv)
        e_st = jnp.exp(l2_st * neg_inv)
        acc = signed_sum(e_ss, e_tt, e_st)
        for _ in range(kernel_num - 1):
            e_ss = e_ss * e_ss
            e_tt = e_tt * e_tt
            e_st = e_st * e_st
            acc = acc + signed_sum(e_ss, e_tt, e_st)
    else:
        # General kernel_mul: one exp per bandwidth, scalar reciprocal hoisted.
        acc = jnp.float32(0.0)
        for q in range(kernel_num):
            neg_inv = -1.0 / (bandwidth * jnp.float32(kernel_mul ** q))
            acc = acc + signed_sum(jnp.exp(l2_ss * neg_inv),
                                   jnp.exp(l2_tt * neg_inv),
                                   jnp.exp(l2_st * neg_inv))

    loss_ref[0, 0] = acc / jnp.float32(bsz * bsz)


def _mmd_loss_small(student, teacher, *, kernel_mul, kernel_num):
    kernel = functools.partial(
        _mmd_small_kernel,
        kernel_mul=float(kernel_mul),
        kernel_num=int(kernel_num),
    )
    out = pl.pallas_call(
        kernel,
        out_shape=jax.ShapeDtypeStruct((1, 1), jnp.float32),
        in_specs=[
            pl.BlockSpec(memory_space=pltpu.VMEM),
            pl.BlockSpec(memory_space=pltpu.VMEM),
        ],
        out_specs=pl.BlockSpec(memory_space=pltpu.SMEM),
    )(student, teacher)
    return out[0, 0]


# ---------------------------------------------------------------------------
# Tiled (i, j) grid kernel (large batch sizes)
# ---------------------------------------------------------------------------
def _mmd_tiled_kernel(scales_ref, row_ref, col_ref, out_ref, acc_ref, *,
                      bsz, kernel_mul, kernel_num):
    i = pl.program_id(0)
    j = pl.program_id(1)

    rows = row_ref[...]                 # (tile, D), native dtype
    cols = col_ref[...]                 # (tile, D)
    tm = rows.shape[0]
    tn = cols.shape[0]

    # Gram tile on the MXU, f32 accumulation.
    gram = jax.lax.dot_general(
        rows, cols, dimension_numbers=(((1,), (1,)), ((), ())),
        preferred_element_type=jnp.float32)                 # (tm, tn)

    r32 = rows.astype(jnp.float32)
    c32 = cols.astype(jnp.float32)
    sq_r = jnp.sum(r32 * r32, axis=-1, keepdims=True)       # (tm, 1)
    sq_c = jnp.sum(c32 * c32, axis=-1, keepdims=True)       # (tn, 1)
    l2 = jnp.maximum(sq_r + jnp.transpose(sq_c) - 2.0 * gram, 0.0)

    # +1 inside the XX / YY quadrants, -1 inside XY / YX (outer product of
    # per-row / per-column signs -- a handful of free VPU ops per element).
    row_idx = jax.lax.broadcasted_iota(jnp.int32, (tm, 1), 0) + i * tm
    col_idx = jax.lax.broadcasted_iota(jnp.int32, (1, tn), 1) + j * tn
    sign = (jnp.where(row_idx < bsz, 1.0, -1.0)
            * jnp.where(col_idx < bsz, 1.0, -1.0))          # (tm, tn) f32

    # Sum of RBF kernels; scales_ref[q] = -1 / (bandwidth * kernel_mul**q).
    if kernel_mul == 2.0:
        e = jnp.exp(l2 * scales_ref[kernel_num - 1])         # widest bandwidth
        k_sum = e
        for _ in range(kernel_num - 1):
            e = e * e                                        # next narrower bw
            k_sum = k_sum + e
    else:
        k_sum = jnp.exp(l2 * scales_ref[0])
        for q in range(1, kernel_num):
            k_sum = k_sum + jnp.exp(l2 * scales_ref[q])

    partial = jnp.sum(sign * k_sum)

    first = jnp.logical_and(i == 0, j == 0)
    last = jnp.logical_and(i == pl.num_programs(0) - 1,
                           j == pl.num_programs(1) - 1)

    @pl.when(first)
    def _():
        acc_ref[0, 0] = partial

    @pl.when(jnp.logical_not(first))
    def _():
        acc_ref[0, 0] = acc_ref[0, 0] + partial

    @pl.when(last)
    def _():
        out_ref[0, 0] = acc_ref[0, 0] / jnp.float32(bsz * bsz)


def _mmd_loss_tiled(student, teacher, *, kernel_mul, kernel_num, tile):
    bsz, d = student.shape
    n = 2 * bsz
    total = jnp.concatenate([student, teacher], axis=0)      # (n, d)

    # Closed-form sum of pairwise squared distances (O(n*d), cheap wrapper
    # work): sum_ij ||x_i - x_j||^2 = 2n * sum_i ||x_i||^2 - 2 ||sum_i x_i||^2.
    tot32 = total.astype(jnp.float32)
    sum_sq = jnp.sum(tot32 * tot32)
    col_sum = jnp.sum(tot32, axis=0)
    sum_l2 = 2.0 * n * sum_sq - 2.0 * jnp.sum(col_sum * col_sum)

    bandwidth = sum_l2 / jnp.float32(n * n - n)
    bandwidth = bandwidth / jnp.float32(kernel_mul ** (kernel_num // 2))
    # Pre-inverted scales so the kernel never divides per element.
    scales = jnp.stack(
        [-1.0 / (bandwidth * jnp.float32(kernel_mul ** q))
         for q in range(kernel_num)]).astype(jnp.float32)     # (kernel_num,)

    num_tiles = n // tile
    kernel = functools.partial(
        _mmd_tiled_kernel,
        bsz=int(bsz),
        kernel_mul=float(kernel_mul),
        kernel_num=int(kernel_num),
    )

    out = pl.pallas_call(
        kernel,
        out_shape=jax.ShapeDtypeStruct((1, 1), jnp.float32),
        grid=(num_tiles, num_tiles),
        in_specs=[
            pl.BlockSpec(memory_space=pltpu.SMEM),            # bandwidth scales
            pl.BlockSpec((tile, d), lambda i, j: (i, 0)),     # row tile of total
            pl.BlockSpec((tile, d), lambda i, j: (j, 0)),     # col tile of total
        ],
        out_specs=pl.BlockSpec(memory_space=pltpu.SMEM),
        scratch_shapes=[pltpu.SMEM((1, 1), jnp.float32)],
        compiler_params=pltpu.CompilerParams(
            # Both axes feed a single scalar accumulator, so they stay
            # sequential.  TODO(synk): emit per-core partial sums so the i axis
            # can be "parallel" and use v7x's second TensorCore.
            dimension_semantics=("arbitrary", "arbitrary")),
    )(scales, total, total)
    return out[0, 0]


# ---------------------------------------------------------------------------
# Public wrapper
# ---------------------------------------------------------------------------
def mmd_loss(student, teacher, *, kernel_mul=2.0, kernel_num=5):
    """Pallas TPU implementation of MMDLoss(kernel_type='rbf').forward."""
    assert student.ndim == 2 and teacher.ndim == 2
    assert student.shape == teacher.shape
    bsz, _ = student.shape
    n = 2 * bsz

    tile = None
    if bsz > _SMALL_BATCH_LIMIT:
        # 256-multiples feed the 256x256 MXU on v6e/v7x; 128 fills v5e's MXU.
        for t in (256, 128):
            if n % t == 0:
                tile = t
                break
    if tile is None:
        # TODO(synk): pad N to a tile multiple instead of falling back to the
        # single-block kernel when a large batch is not 128-divisible.
        return _mmd_loss_small(student, teacher,
                               kernel_mul=kernel_mul, kernel_num=kernel_num)
    return _mmd_loss_tiled(student, teacher,
                           kernel_mul=kernel_mul, kernel_num=kernel_num,
                           tile=tile)


# ---------------------------------------------------------------------------
# Pure-JAX reference mirroring the PyTorch module (validation only)
# ---------------------------------------------------------------------------
def _mmd_loss_ref(student, teacher, *, kernel_mul=2.0, kernel_num=5):
    bsz = student.shape[0]
    total = jnp.concatenate(
        [student.astype(jnp.float32), teacher.astype(jnp.float32)], axis=0)
    n = total.shape[0]
    diff = total[None, :, :] - total[:, None, :]
    l2 = jnp.sum(diff * diff, axis=2)
    bandwidth = jnp.sum(l2) / (n * n - n)
    bandwidth = bandwidth / (kernel_mul ** (kernel_num // 2))
    kernels = sum(
        jnp.exp(-l2 / (bandwidth * kernel_mul ** i)) for i in range(kernel_num))
    xx = kernels[:bsz, :bsz]
    yy = kernels[bsz:, bsz:]
    xy = kernels[:bsz, bsz:]
    yx = kernels[bsz:, :bsz]
    return jnp.mean(xx + yy - xy - yx)


if __name__ == "__main__":
    key = jax.random.PRNGKey(0)
    k_s, k_t, k_s2, k_t2 = jax.random.split(key, 4)

    # Small case (fused single-block path): batch=8, hidden=32.
    B, D = 8, 32
    student = jax.random.normal(k_s, (B, D), dtype=jnp.float32)
    teacher = jax.random.normal(k_t, (B, D), dtype=jnp.float32) + 0.5
    loss_small = jax.block_until_ready(mmd_loss(student, teacher))
    ref_small = jax.block_until_ready(_mmd_loss_ref(student, teacher))
    assert jnp.allclose(loss_small, ref_small, rtol=1e-4, atol=1e-5), (
        loss_small, ref_small)

    # Larger case exercising the tiled (i, j) grid path: batch=384, hidden=64.
    B2, D2 = 384, 64
    student2 = jax.random.normal(k_s2, (B2, D2), dtype=jnp.float32)
    teacher2 = jax.random.normal(k_t2, (B2, D2), dtype=jnp.float32) + 0.5
    loss_big = jax.block_until_ready(mmd_loss(student2, teacher2))
    ref_big = jax.block_until_ready(_mmd_loss_ref(student2, teacher2))
    assert jnp.allclose(loss_big, ref_big, rtol=2e-3, atol=1e-4), (
        loss_big, ref_big)

    print("KERNEL_OK")
</pallas_src>

<mosaic_0001>
module attributes {stable_mosaic.version = 11 : i64} {
  func.func @_mmd_small_kernel(%arg0: memref<8x32xf32, #tpu.memory_space<vmem>>, %arg1: memref<8x32xf32, #tpu.memory_space<vmem>>, %arg2: memref<1x1xf32, #tpu.memory_space<smem>>) attributes {dimension_semantics = [], scalar_prefetch = 0 : i64, scratch_operands = 0 : i64, tpu.core_type = #tpu.core_type<tc>} {
    %c0 = arith.constant 0 : index
    %c0_0 = arith.constant 0 : index
    %0 = vector.load %arg0[%c0, %c0_0] : memref<8x32xf32, #tpu.memory_space<vmem>>, vector<8x32xf32>
    %c0_1 = arith.constant 0 : index
    %c0_2 = arith.constant 0 : index
    %1 = vector.load %arg1[%c0_1, %c0_2] : memref<8x32xf32, #tpu.memory_space<vmem>>, vector<8x32xf32>
    %cst = arith.constant dense<0.000000e+00> : vector<8x8xf32>
    %2 = tpu.matmul %0, %0, %cst {dimension_numbers = #tpu.dot_dimension_numbers<[1], [1], [0], [0], [0, 0, 1, 0], [], []>} : vector<8x32xf32>, vector<8x32xf32>, vector<8x8xf32> -> vector<8x8xf32>
    %cst_3 = arith.constant dense<0.000000e+00> : vector<8x8xf32>
    %3 = tpu.matmul %1, %1, %cst_3 {dimension_numbers = #tpu.dot_dimension_numbers<[1], [1], [0], [0], [0, 0, 1, 0], [], []>} : vector<8x32xf32>, vector<8x32xf32>, vector<8x8xf32> -> vector<8x8xf32>
    %cst_4 = arith.constant dense<0.000000e+00> : vector<8x8xf32>
    %4 = tpu.matmul %0, %1, %cst_4 {dimension_numbers = #tpu.dot_dimension_numbers<[1], [1], [0], [0], [0, 0, 1, 0], [], []>} : vector<8x32xf32>, vector<8x32xf32>, vector<8x8xf32> -> vector<8x8xf32>
    %5 = arith.mulf %0, %0 : vector<8x32xf32>
    %cst_5 = arith.constant dense<0.000000e+00> : vector<8xf32>
    %6 = vector.multi_reduction <add>, %5, %cst_5 [1] : vector<8x32xf32> to vector<8xf32>
    %7 = vector.shape_cast %6 : vector<8xf32> to vector<8x1xf32>
    %8 = arith.mulf %1, %1 : vector<8x32xf32>
    %cst_6 = arith.constant dense<0.000000e+00> : vector<8xf32>
    %9 = vector.multi_reduction <add>, %8, %cst_6 [1] : vector<8x32xf32> to vector<8xf32>
    %10 = vector.shape_cast %9 : vector<8xf32> to vector<8x1xf32>
    %11 = tpu.transpose %7, [1, 0] : vector<8x1xf32> -> vector<1x8xf32>
    %12 = vector.broadcast %7 : vector<8x1xf32> to vector<8x8xf32>
    %13 = vector.broadcast %11 : vector<1x8xf32> to vector<8x8xf32>
    %14 = arith.addf %12, %13 : vector<8x8xf32>
    %cst_7 = arith.constant 2.000000e+00 : f32
    %15 = vector.broadcast %cst_7 : f32 to vector<8x8xf32>
    %16 = arith.mulf %15, %2 : vector<8x8xf32>
    %17 = arith.subf %14, %16 : vector<8x8xf32>
    %cst_8 = arith.constant 0.000000e+00 : f32
    %18 = vector.broadcast %cst_8 : f32 to vector<8x8xf32>
    %19 = arith.maximumf %17, %18 : vector<8x8xf32>
    %20 = tpu.transpose %10, [1, 0] : vector<8x1xf32> -> vector<1x8xf32>
    %21 = vector.broadcast %10 : vector<8x1xf32> to vector<8x8xf32>
    %22 = vector.broadcast %20 : vector<1x8xf32> to vector<8x8xf32>
    %23 = arith.addf %21, %22 : vector<8x8xf32>
    %cst_9 = arith.constant 2.000000e+00 : f32
    %24 = vector.broadcast %cst_9 : f32 to vector<8x8xf32>
    %25 = arith.mulf %24, %3 : vector<8x8xf32>
    %26 = arith.subf %23, %25 : vector<8x8xf32>
    %cst_10 = arith.constant 0.000000e+00 : f32
    %27 = vector.broadcast %cst_10 : f32 to vector<8x8xf32>
    %28 = arith.maximumf %26, %27 : vector<8x8xf32>
    %29 = tpu.transpose %10, [1, 0] : vector<8x1xf32> -> vector<1x8xf32>
    %30 = vector.broadcast %7 : vector<8x1xf32> to vector<8x8xf32>
    %31 = vector.broadcast %29 : vector<1x8xf32> to vector<8x8xf32>
    %32 = arith.addf %30, %31 : vector<8x8xf32>
    %cst_11 = arith.constant 2.000000e+00 : f32
    %33 = vector.broadcast %cst_11 : f32 to vector<8x8xf32>
    %34 = arith.mulf %33, %4 : vector<8x8xf32>
    %35 = arith.subf %32, %34 : vector<8x8xf32>
    %cst_12 = arith.constant 0.000000e+00 : f32
    %36 = vector.broadcast %cst_12 : f32 to vector<8x8xf32>
    %37 = arith.maximumf %35, %36 : vector<8x8xf32>
    %38 = vector.shape_cast %19 : vector<8x8xf32> to vector<1x8x8xf32>
    %cst_13 = arith.constant dense<0.000000e+00> : vector<1xf32>
    %39 = vector.multi_reduction <add>, %38, %cst_13 [1, 2] : vector<1x8x8xf32> to vector<1xf32>
    %40 = vector.shape_cast %39 : vector<1xf32> to vector<1x1x1xf32>
    %41 = vector.extract %40[0, 0, 0] : f32 from vector<1x1x1xf32>
    %42 = vector.shape_cast %28 : vector<8x8xf32> to vector<1x8x8xf32>
    %cst_14 = arith.constant dense<0.000000e+00> : vector<1xf32>
    %43 = vector.multi_reduction <add>, %42, %cst_14 [1, 2] : vector<1x8x8xf32> to vector<1xf32>
    %44 = vector.shape_cast %43 : vector<1xf32> to vector<1x1x1xf32>
    %45 = vector.extract %44[0, 0, 0] : f32 from vector<1x1x1xf32>
    %46 = arith.addf %41, %45 : f32
    %47 = vector.shape_cast %37 : vector<8x8xf32> to vector<1x8x8xf32>
    %cst_15 = arith.constant dense<0.000000e+00> : vector<1xf32>
    %48 = vector.multi_reduction <add>, %47, %cst_15 [1, 2] : vector<1x8x8xf32> to vector<1xf32>
    %49 = vector.shape_cast %48 : vector<1xf32> to vector<1x1x1xf32>
    %50 = vector.extract %49[0, 0, 0] : f32 from vector<1x1x1xf32>
    %cst_16 = arith.constant 2.000000e+00 : f32
    %51 = arith.mulf %cst_16, %50 : f32
    %52 = arith.addf %46, %51 : f32
    %cst_17 = arith.constant 2.400000e+02 : f32
    %53 = arith.divf %52, %cst_17 : f32
    %cst_18 = arith.constant 4.000000e+00 : f32
    %54 = arith.divf %53, %cst_18 : f32
    %cst_19 = arith.constant 1.600000e+01 : f32
    %55 = arith.mulf %54, %cst_19 : f32
    %cst_20 = arith.constant -1.000000e+00 : f32
    %56 = arith.divf %cst_20, %55 : f32
    %57 = vector.broadcast %56 : f32 to vector<8x8xf32>
    %58 = arith.mulf %19, %57 : vector<8x8xf32>
    %59 = math.exp %58 : vector<8x8xf32>
    %60 = vector.broadcast %56 : f32 to vector<8x8xf32>
    %61 = arith.mulf %28, %60 : vector<8x8xf32>
    %62 = math.exp %61 : vector<8x8xf32>
    %63 = vector.broadcast %56 : f32 to vector<8x8xf32>
    %64 = arith.mulf %37, %63 : vector<8x8xf32>
    %65 = math.exp %64 : vector<8x8xf32>
    %66 = vector.shape_cast %59 : vector<8x8xf32> to vector<1x8x8xf32>
    %cst_21 = arith.constant dense<0.000000e+00> : vector<1xf32>
    %67 = vector.multi_reduction <add>, %66, %cst_21 [1, 2] : vector<1x8x8xf32> to vector<1xf32>
    %68 = vector.shape_cast %67 : vector<1xf32> to vector<1x1x1xf32>
    %69 = vector.extract %68[0, 0, 0] : f32 from vector<1x1x1xf32>
    %70 = vector.shape_cast %62 : vector<8x8xf32> to vector<1x8x8xf32>
    %cst_22 = arith.constant dense<0.000000e+00> : vector<1xf32>
    %71 = vector.multi_reduction <add>, %70, %cst_22 [1, 2] : vector<1x8x8xf32> to vector<1xf32>
    %72 = vector.shape_cast %71 : vector<1xf32> to vector<1x1x1xf32>
    %73 = vector.extract %72[0, 0, 0] : f32 from vector<1x1x1xf32>
    %74 = arith.addf %69, %73 : f32
    %75 = vector.shape_cast %65 : vector<8x8xf32> to vector<1x8x8xf32>
    %cst_23 = arith.constant dense<0.000000e+00> : vector<1xf32>
    %76 = vector.multi_reduction <add>, %75, %cst_23 [1, 2] : vector<1x8x8xf32> to vector<1xf32>
    %77 = vector.shape_cast %76 : vector<1xf32> to vector<1x1x1xf32>
    %78 = vector.extract %77[0, 0, 0] : f32 from vector<1x1x1xf32>
    %cst_24 = arith.constant 2.000000e+00 : f32
    %79 = arith.mulf %cst_24, %78 : f32
    %80 = arith.subf %74, %79 : f32
    %81 = arith.mulf %59, %59 : vector<8x8xf32>
    %82 = arith.mulf %62, %62 : vector<8x8xf32>
    %83 = arith.mulf %65, %65 : vector<8x8xf32>
    %84 = vector.shape_cast %81 : vector<8x8xf32> to vector<1x8x8xf32>
    %cst_25 = arith.constant dense<0.000000e+00> : vector<1xf32>
    %85 = vector.multi_reduction <add>, %84, %cst_25 [1, 2] : vector<1x8x8xf32> to vector<1xf32>
    %86 = vector.shape_cast %85 : vector<1xf32> to vector<1x1x1xf32>
    %87 = vector.extract %86[0, 0, 0] : f32 from vector<1x1x1xf32>
    %88 = vector.shape_cast %82 : vector<8x8xf32> to vector<1x8x8xf32>
    %cst_26 = arith.constant dense<0.000000e+00> : vector<1xf32>
    %89 = vector.multi_reduction <add>, %88, %cst_26 [1, 2] : vector<1x8x8xf32> to vector<1xf32>
    %90 = vector.shape_cast %89 : vector<1xf32> to vector<1x1x1xf32>
    %91 = vector.extract %90[0, 0, 0] : f32 from vector<1x1x1xf32>
    %92 = arith.addf %87, %91 : f32
    %93 = vector.shape_cast %83 : vector<8x8xf32> to vector<1x8x8xf32>
    %cst_27 = arith.constant dense<0.000000e+00> : vector<1xf32>
    %94 = vector.multi_reduction <add>, %93, %cst_27 [1, 2] : vector<1x8x8xf32> to vector<1xf32>
    %95 = vector.shape_cast %94 : vector<1xf32> to vector<1x1x1xf32>
    %96 = vector.extract %95[0, 0, 0] : f32 from vector<1x1x1xf32>
    %cst_28 = arith.constant 2.000000e+00 : f32
    %97 = arith.mulf %cst_28, %96 : f32
    %98 = arith.subf %92, %97 : f32
    %99 = arith.addf %80, %98 : f32
    %100 = arith.mulf %81, %81 : vector<8x8xf32>
    %101 = arith.mulf %82, %82 : vector<8x8xf32>
    %102 = arith.mulf %83, %83 : vector<8x8xf32>
    %103 = vector.shape_cast %100 : vector<8x8xf32> to vector<1x8x8xf32>
    %cst_29 = arith.constant dense<0.000000e+00> : vector<1xf32>
    %104 = vector.multi_reduction <add>, %103, %cst_29 [1, 2] : vector<1x8x8xf32> to vector<1xf32>
    %105 = vector.shape_cast %104 : vector<1xf32> to vector<1x1x1xf32>
    %106 = vector.extract %105[0, 0, 0] : f32 from vector<1x1x1xf32>
    %107 = vector.shape_cast %101 : vector<8x8xf32> to vector<1x8x8xf32>
    %cst_30 = arith.constant dense<0.000000e+00> : vector<1xf32>
    %108 = vector.multi_reduction <add>, %107, %cst_30 [1, 2] : vector<1x8x8xf32> to vector<1xf32>
    %109 = vector.shape_cast %108 : vector<1xf32> to vector<1x1x1xf32>
    %110 = vector.extract %109[0, 0, 0] : f32 from vector<1x1x1xf32>
    %111 = arith.addf %106, %110 : f32
    %112 = vector.shape_cast %102 : vector<8x8xf32> to vector<1x8x8xf32>
    %cst_31 = arith.constant dense<0.000000e+00> : vector<1xf32>
    %113 = vector.multi_reduction <add>, %112, %cst_31 [1, 2] : vector<1x8x8xf32> to vector<1xf32>
    %114 = vector.shape_cast %113 : vector<1xf32> to vector<1x1x1xf32>
    %115 = vector.extract %114[0, 0, 0] : f32 from vector<1x1x1xf32>
    %cst_32 = arith.constant 2.000000e+00 : f32
    %116 = arith.mulf %cst_32, %115 : f32
    %117 = arith.subf %111, %116 : f32
    %118 = arith.addf %99, %117 : f32
    %119 = arith.mulf %100, %100 : vector<8x8xf32>
    %120 = arith.mulf %101, %101 : vector<8x8xf32>
    %121 = arith.mulf %102, %102 : vector<8x8xf32>
    %122 = vector.shape_cast %119 : vector<8x8xf32> to vector<1x8x8xf32>
    %cst_33 = arith.constant dense<0.000000e+00> : vector<1xf32>
    %123 = vector.multi_reduction <add>, %122, %cst_33 [1, 2] : vector<1x8x8xf32> to vector<1xf32>
    %124 = vector.shape_cast %123 : vector<1xf32> to vector<1x1x1xf32>
    %125 = vector.extract %124[0, 0, 0] : f32 from vector<1x1x1xf32>
    %126 = vector.shape_cast %120 : vector<8x8xf32> to vector<1x8x8xf32>
    %cst_34 = arith.constant dense<0.000000e+00> : vector<1xf32>
    %127 = vector.multi_reduction <add>, %126, %cst_34 [1, 2] : vector<1x8x8xf32> to vector<1xf32>
    %128 = vector.shape_cast %127 : vector<1xf32> to vector<1x1x1xf32>
    %129 = vector.extract %128[0, 0, 0] : f32 from vector<1x1x1xf32>
    %130 = arith.addf %125, %129 : f32
    %131 = vector.shape_cast %121 : vector<8x8xf32> to vector<1x8x8xf32>
    %cst_35 = arith.constant dense<0.000000e+00> : vector<1xf32>
    %132 = vector.multi_reduction <add>, %131, %cst_35 [1, 2] : vector<1x8x8xf32> to vector<1xf32>
    %133 = vector.shape_cast %132 : vector<1xf32> to vector<1x1x1xf32>
    %134 = vector.extract %133[0, 0, 0] : f32 from vector<1x1x1xf32>
    %cst_36 = arith.constant 2.000000e+00 : f32
    %135 = arith.mulf %cst_36, %134 : f32
    %136 = arith.subf %130, %135 : f32
    %137 = arith.addf %118, %136 : f32
    %138 = arith.mulf %119, %119 : vector<8x8xf32>
    %139 = arith.mulf %120, %120 : vector<8x8xf32>
    %140 = arith.mulf %121, %121 : vector<8x8xf32>
    %141 = vector.shape_cast %138 : vector<8x8xf32> to vector<1x8x8xf32>
    %cst_37 = arith.constant dense<0.000000e+00> : vector<1xf32>
    %142 = vector.multi_reduction <add>, %141, %cst_37 [1, 2] : vector<1x8x8xf32> to vector<1xf32>
    %143 = vector.shape_cast %142 : vector<1xf32> to vector<1x1x1xf32>
    %144 = vector.extract %143[0, 0, 0] : f32 from vector<1x1x1xf32>
    %145 = vector.shape_cast %139 : vector<8x8xf32> to vector<1x8x8xf32>
    %cst_38 = arith.constant dense<0.000000e+00> : vector<1xf32>
    %146 = vector.multi_reduction <add>, %145, %cst_38 [1, 2] : vector<1x8x8xf32> to vector<1xf32>
    %147 = vector.shape_cast %146 : vector<1xf32> to vector<1x1x1xf32>
    %148 = vector.extract %147[0, 0, 0] : f32 from vector<1x1x1xf32>
    %149 = arith.addf %144, %148 : f32
    %150 = vector.shape_cast %140 : vector<8x8xf32> to vector<1x8x8xf32>
    %cst_39 = arith.constant dense<0.000000e+00> : vector<1xf32>
    %151 = vector.multi_reduction <add>, %150, %cst_39 [1, 2] : vector<1x8x8xf32> to vector<1xf32>
    %152 = vector.shape_cast %151 : vector<1xf32> to vector<1x1x1xf32>
    %153 = vector.extract %152[0, 0, 0] : f32 from vector<1x1x1xf32>
    %cst_40 = arith.constant 2.000000e+00 : f32
    %154 = arith.mulf %cst_40, %153 : f32
    %155 = arith.subf %149, %154 : f32
    %156 = arith.addf %137, %155 : f32
    %cst_41 = arith.constant 6.400000e+01 : f32
    %157 = arith.divf %156, %cst_41 : f32
    %c0_42 = arith.constant 0 : index
    %c0_43 = arith.constant 0 : index
    %158 = memref.load %arg2[%c0_42, %c0_43] : memref<1x1xf32, #tpu.memory_space<smem>>
    memref.store %157, %arg2[%c0_42, %c0_43] : memref<1x1xf32, #tpu.memory_space<smem>>
    return
  }
}

</mosaic_0001>

<bundles_post_ra>
// kernel: tpu_custom_call.1
= control target key start
LH: loop header
LB: loop body
LE: loop exit
PB: predicated region body
PF: predicated region fallthrough
CT: control target
= control target key end

     0   :  { %7 = vsyncpa [#allocation3], 0  ;;  %s818_s0 = inlined_call_operand.hbm [shape: f32[8,32], index: 0, kind: input, shape index: {}]   ;;  %s819_s1 = inlined_call_operand.hbm [shape: f32[8,32], index: 1, kind: input, shape index: {}]   ;;  %s820_s2 = inlined_call_operand.hbm [shape: f32[1,1], index: 2, kind: output, shape index: {}]  }
   0x1   :  { %8 = vsyncpa [#allocation6], 0 }
   0x2   :  { %9 = vsyncpa [#allocation4], 0  ;;  %s741_s9 = smov [#allocation2]   ;;  %s742_s11 = smov [#allocation5]  }
   0x3   :  { %s16_s10 = sshll.u32 %s741_s9, 4  ;;  %s26_s12 = sshll.u32 %s742_s11, 4  ;;  %s17_s10 = int_to_ptr.vmem [resolvable:$true] %s16_s10  ;;  %s27_s12 = int_to_ptr.vmem [resolvable:$true] %s26_s12 }
   0x4   :  { %s681_s15 = scalar_lea.hbm %s818_s0, 128 }
   0x5   :  { %p682_p0 = scmp.ne.s32.totalorder %s818_s0, %s681_s15  ;;  %p685_p1 = scmp.lt.u32.totalorder %s681_s15, %s818_s0 }
   0x7   :  { %p687_p2 = pnand %p685_p1, %p682_p0 }
   0x9   :  { %690 = shalt.err (!%p687_p2)
}
   0xa   :  { %s691_s20 = scalar_lea.vmem %s17_s10, 128  ;;  %p696_p4 = scmp.lt.s32.totalorder %s17_s10, %s17_s10 }
   0xb   :  { %p692_p3 = scmp.ne.s32.totalorder %s17_s10, %s691_s20  ;;  %p697_p5 = scmp.lt.s32.totalorder %s691_s20, %s691_s20 }
   0xd   :  { %p698_p6 = por %p697_p5, %p696_p4 }
   0xf   :  { %p699_p7 = pnand %p698_p6, %p692_p3 }
  0x11   :  { %702 = shalt.err (!%p699_p7)
}
  0x12   :  { %19 = dma.hbm_to_vmem [thread:$0]  %s818_s0, 128, %s17_s10, [#allocation3]  }
  0x13   :  { %s703_s25 = scalar_lea.hbm %s819_s1, 128 }
  0x14   :  { %p704_p8 = scmp.ne.s32.totalorder %s819_s1, %s703_s25  ;;  %p707_p9 = scmp.lt.u32.totalorder %s703_s25, %s819_s1 }
  0x16   :  { %p709_p10 = pnand %p707_p9, %p704_p8 }
  0x18   :  { %712 = shalt.err (!%p709_p10)
}
  0x19   :  { %s713_s30 = scalar_lea.vmem %s27_s12, 128  ;;  %p718_p12 = scmp.lt.s32.totalorder %s27_s12, %s27_s12 }
  0x1a   :  { %p714_p11 = scmp.ne.s32.totalorder %s27_s12, %s713_s30  ;;  %p719_p13 = scmp.lt.s32.totalorder %s713_s30, %s713_s30 }
  0x1c   :  { %p720_p0 = por %p719_p13, %p718_p12 }
  0x1e   :  { %p721_p1 = pnand %p720_p0, %p714_p11 }
  0x20   :  { %724 = shalt.err (!%p721_p1)
}
  0x21   :  { %29 = dma.hbm_to_vmem [thread:$0]  %s819_s1, 128, %s27_s12, [#allocation6]  }
  0x22   :  { %735 = dma.done.wait [#allocation3], 128  }
  0x23   :  { %736 = vsyncadd [#allocation3], 4294967168 }
  0x24   :  { %737 = dma.done.wait [#allocation6], 128  }
  0x25   :  { %738 = vsyncadd [#allocation6], 4294967168  ;;  %v743_v0 = vmov 0.0   ;;  %vm744_vm0 = vmmov 0   ;;  %v36_v1 = vld [vmem:[#allocation2] sm:$0xff]  ;;  %vm38_vm1 = vcmask 261120   ;;  %v295_v15 = vlaneseq }
  0x26   :  { %615 = vmatprep.subr.mxu0 %v743_v0  ;;  %617 = vmatprep.mubr.msk.f32.mxu0 %vm744_vm0, %v743_v0  ;;  %v37_v2 = vld [vmem:[#allocation5] sm:$0xff]  ;;  %v255_v3 = vmul.f32 %v36_v1, %v36_v1  ;;  %vm347_vm2 = vcmask 64512  }
  0x27   :  { %620 = vmatprep.subr.mxu1 %v743_v0  ;;  %622 = vmatprep.mubr.msk.f32.mxu1 %vm744_vm0, %v743_v0  ;;  %v259_v4 = vmul.f32 %v37_v2, %v37_v2  ;;  %v296_v16 = vshrl.u32 %v295_v15, 7 }
  0x28   :  { %616 = vmatpush3.xpose.msk.msra.mxu0 %vm38_vm1, %v36_v1  ;;  %621 = vmatpush3.xpose.msk.msra.mxu1 %vm38_vm1, %v37_v2  ;;  %v256_v5 = vsel %vm38_vm1, %v255_v3, 0.0 }
  0x29   :  { %625 = vmatprep.subr.mxu0 %v743_v0  ;;  %257 = vadd.xlane.f32.xlu0 %v256_v5  ;;  %v260_v6 = vsel %vm38_vm1, %v259_v4, 0.0  ;;  %v297_v17 = vsub.s32 0, %v296_v16 }
  0x2b   :  { %618 = vmatmul.mubr.msk.f32.vlgmr.msra.gmra.mrb[0].mxu0 %vm38_vm1, %v36_v1  ;;  %623 = vmatmul.mubr.msk.f32.vlgmr.msra.gmra.mrb[0].mxu1 %vm38_vm1, %v37_v2 }
  0x2c   :  { %626 = vmatpush3.xpose.msk.msra.mxu0 %vm38_vm1, %v37_v2  ;;  %627 = vmatprep.mubr.msk.f32.mxu0 %vm744_vm0, %v743_v0 }
  0x2d   :  { %261 = vadd.xlane.f32.xlu0 %v260_v6 }
  0x2f   :  { %628 = vmatmul.mubr.msk.f32.vlgmr.msra.gmra.mrb[2].mxu0 %vm38_vm1, %v36_v1 }
  0xb6   :  { %v258_v7 = vpop.xlane.xlu0 %257 }
  0xb7   :  { %263 = vxpose.xlu1.b32.start.end [1/1] (short) (narrow) %v258_v7, 8 }
  0xba   :  { %v262_v8 = vpop.xlane.xlu0 %261 }
  0xbb   :  { %303 = vxpose.xlu1.b32.start.end [1/1] (short) (narrow) %v262_v8, 8 }
  0xfe   :  { %v108_v9 = vpop.f32.mrb[0].mxu0  ;;  %v181_v11 = vpop.f32.mrb[0].mxu1 }
  0xff   :  { %v619_v10 = vpop.f32.mrb[1].mxu0  ;;  %v624_v12 = vpop.f32.mrb[1].mxu1  ;;  %v300_v20 = vmul.f32 2.0, %v108_v9  ;;  %v340_v25 = vmul.f32 2.0, %v181_v11 }
 0x102   :  { %v251_v13 = vpop.f32.mrb[2].mxu0 }
 0x103   :  { %v629_v14 = vpop.f32.mrb[3].mxu0  ;;  %v344_v26 = vmul.f32 2.0, %v251_v13 }
 0x137   :  { %v279_v18 = vpop.trf.xlu1 }
 0x138   :  { %v298_v19 = vrot.slane %v279_v18, %v297_v17 }
 0x13a   :  { %v299_v21 = vadd.f32 %v298_v19, %v258_v7 }
 0x13b   :  { %v319_v22 = vpop.trf.xlu1 }
 0x13c   :  { %v301_v23 = vsub.f32 %v299_v21, %v300_v20  ;;  %v338_v24 = vrot.slane %v319_v22, %v297_v17 }
 0x13e   :  { %v339_v27 = vadd.f32 %v338_v24, %v262_v8  ;;  %v343_v28 = vadd.f32 %v338_v24, %v258_v7  ;;  %v302_v29 = vmax.f32 %v301_v23, 0.0 }
 0x140   :  { %v341_v30 = vsub.f32 %v339_v27, %v340_v25  ;;  %v345_v31 = vsub.f32 %v343_v28, %v344_v26  ;;  %v348_v32 = vsel %vm347_vm2, %v302_v29, 0.0 }
 0x141   :  { %349 = vadd.xlane.f32.xlu0 %v348_v32 }
 0x142   :  { %v342_v33 = vmax.f32 %v341_v30, 0.0  ;;  %v346_v34 = vmax.f32 %v345_v31, 0.0 }
 0x144   :  { %v358_v35 = vsel %vm347_vm2, %v342_v33, 0.0  ;;  %v369_v36 = vsel %vm347_vm2, %v346_v34, 0.0 }
 0x145   :  { %359 = vadd.xlane.f32.xlu1 %v358_v35  ;;  %370 = vadd.xlane.f32.xlu0 %v369_v36 }
 0x1ce   :  { %v350_v37 = vpop.xlane.xlu0 %349 }
 0x1cf   :  { %v351_v38 = vrot.slane %v350_v37, 4 }
 0x1d1   :  { %v352_v39 = vadd.f32 %v351_v38, %v350_v37 }
 0x1d2   :  { %v360_v40 = vpop.xlane.xlu1 %359  ;;  %v371_v41 = vpop.xlane.xlu0 %370 }
 0x1d3   :  { %v353_v42 = vrot.slane %v352_v39, 2  ;;  %v361_v43 = vrot.slane %v360_v40, 4  ;;  %v372_v44 = vrot.slane %v371_v41, 4 }
 0x1d5   :  { %v362_v45 = vadd.f32 %v361_v43, %v360_v40  ;;  %v373_v46 = vadd.f32 %v372_v44, %v371_v41  ;;  %v354_v47 = vadd.f32 %v353_v42, %v352_v39 }
 0x1d7   :  { %v363_v48 = vrot.slane %v362_v45, 2  ;;  %v374_v49 = vrot.slane %v373_v46, 2  ;;  %v355_v50 = vrot.slane %v354_v47, 1 }
 0x1d9   :  { %v356_v51 = vadd.f32 %v355_v50, %v354_v47  ;;  %v364_v52 = vadd.f32 %v363_v48, %v362_v45  ;;  %v375_v53 = vadd.f32 %v374_v49, %v373_v46 }
 0x1db   :  { %630 = vpush %v356_v51  ;;  %v365_v54 = vrot.slane %v364_v52, 1  ;;  %v376_v55 = vrot.slane %v375_v53, 1 }
 0x1dd   :  { %v366_v56 = vadd.f32 %v365_v54, %v364_v52  ;;  %v377_v57 = vadd.f32 %v376_v55, %v375_v53 }
 0x1df   :  { %632 = vpush %v366_v56 }
 0x1e0   :  { %634 = vpush %v377_v57 }
 0x20c   :  { %s631_s1 = spop %630 }
 0x210   :  { %s633_s4 = spop %632 }
 0x211   :  { %s368_s5 = sadd.f32 %s633_s4, %s631_s1  ;;  %s635_s6 = spop %634 }
 0x212   :  { %s379_s7 = smul.f32 2.0, %s635_s6 }
 0x214   :  { %s380_s8 = sadd.f32 %s379_s7, %s368_s5 }
 0x216   :  { %s383_s9 = smul.f32 0.004166667, %s380_s8 }
 0x218   :  { %s386_s10 = smul.f32 0.25, %s383_s9 }
 0x21a   :  { %s387_s11 = smul.f32 16.0, %s386_s10 }
 0x21c   :  { %v388_v58 = vstv %s387_s11 }
 0x21d   :  { %673 = vrcp.f32 %v388_v58 }
 0x227   :  { %v674_v59 = vpop.eup %673 }
 0x228   :  { %636 = vpush %v674_v59 }
 0x259   :  { %s637_s12 = spop %636 }
 0x25a   :  { %s391_s13 = smul.f32 -1.0, %s637_s12 }
 0x25c   :  { %v392_v60 = vstv %s391_s13 }
 0x25d   :  { %v393_v61 = vmul.f32 %v392_v60, %v302_v29  ;;  %v396_v62 = vmul.f32 %v392_v60, %v342_v33  ;;  %v399_v63 = vmul.f32 %v392_v60, %v346_v34 }
 0x25f   :  { %v394_v0 = vmul.f32 1.442695, %v393_v61  ;;  %v397_v1 = vmul.f32 1.442695, %v396_v62  ;;  %v400_v2 = vmul.f32 1.442695, %v399_v63 }
 0x261   :  { %675 = vpow2.f32 %v394_v0 }
 0x262   :  { %677 = vpow2.f32 %v397_v1 }
 0x263   :  { %679 = vpow2.f32 %v400_v2 }
 0x26b   :  { %v676_v3 = vpop.eup %675 }
 0x26c   :  { %v678_v4 = vpop.eup %677  ;;  %v402_v5 = vsel %vm347_vm2, %v676_v3, 0.0  ;;  %v435_v6 = vmul.f32 %v676_v3, %v676_v3 }
 0x26d   :  { %v680_v7 = vpop.eup %679  ;;  %403 = vadd.xlane.f32.xlu0 %v402_v5  ;;  %v436_v8 = vmul.f32 %v678_v4, %v678_v4  ;;  %v412_v13 = vsel %vm347_vm2, %v678_v4, 0.0 }
 0x26e   :  { %v437_v9 = vmul.f32 %v680_v7, %v680_v7  ;;  %v472_v10 = vmul.f32 %v435_v6, %v435_v6  ;;  %v423_v17 = vsel %vm347_vm2, %v680_v7, 0.0  ;;  %v438_v21 = vsel %vm347_vm2, %v435_v6, 0.0 }
 0x26f   :  { %v473_v11 = vmul.f32 %v436_v8, %v436_v8  ;;  %v448_v24 = vsel %vm347_vm2, %v436_v8, 0.0 }
 0x270   :  { %v474_v12 = vmul.f32 %v437_v9, %v437_v9  ;;  %v509_v16 = vmul.f32 %v472_v10, %v472_v10  ;;  %v459_v26 = vsel %vm347_vm2, %v437_v9, 0.0  ;;  %v475_v27 = vsel %vm347_vm2, %v472_v10, 0.0 }
 0x271   :  { %413 = vadd.xlane.f32.xlu0 %v412_v13  ;;  %v510_v15 = vmul.f32 %v473_v11, %v473_v11  ;;  %v485_v28 = vsel %vm347_vm2, %v473_v11, 0.0 }
 0x272   :  { %v496_v14 = vsel %vm347_vm2, %v474_v12, 0.0  ;;  %v546_v19 = vmul.f32 %v509_v16, %v509_v16  ;;  %v511_v20 = vmul.f32 %v474_v12, %v474_v12  ;;  %v512_v29 = vsel %vm347_vm2, %v509_v16, 0.0 }
 0x273   :  { %497 = vadd.xlane.f32.xlu1 %v496_v14  ;;  %v522_v18 = vsel %vm347_vm2, %v510_v15, 0.0  ;;  %v547_v31 = vmul.f32 %v510_v15, %v510_v15 }
 0x274   :  { %v549_v22 = vsel %vm347_vm2, %v546_v19, 0.0  ;;  %v548_v23 = vmul.f32 %v511_v20, %v511_v20  ;;  %v533_v30 = vsel %vm347_vm2, %v511_v20, 0.0 }
 0x275   :  { %424 = vadd.xlane.f32.xlu0 %v423_v17  ;;  %v559_v32 = vsel %vm347_vm2, %v547_v31, 0.0 }
 0x276   :  { %v570_v25 = vsel %vm347_vm2, %v548_v23, 0.0 }
 0x277   :  { %523 = vadd.xlane.f32.xlu1 %v522_v18 }
 0x279   :  { %439 = vadd.xlane.f32.xlu0 %v438_v21 }
 0x27b   :  { %550 = vadd.xlane.f32.xlu1 %v549_v22 }
 0x27d   :  { %449 = vadd.xlane.f32.xlu0 %v448_v24 }
 0x27f   :  { %571 = vadd.xlane.f32.xlu1 %v570_v25 }
 0x281   :  { %460 = vadd.xlane.f32.xlu0 %v459_v26 }
 0x285   :  { %476 = vadd.xlane.f32.xlu0 %v475_v27 }
 0x289   :  { %486 = vadd.xlane.f32.xlu0 %v485_v28 }
 0x28d   :  { %513 = vadd.xlane.f32.xlu0 %v512_v29 }
 0x291   :  { %534 = vadd.xlane.f32.xlu0 %v533_v30 }
 0x295   :  { %560 = vadd.xlane.f32.xlu0 %v559_v32 }
 0x2fa   :  { %v404_v33 = vpop.xlane.xlu0 %403 }
 0x2fb   :  { %v405_v34 = vrot.slane %v404_v33, 4 }
 0x2fd   :  { %v406_v35 = vadd.f32 %v405_v34, %v404_v33 }
 0x2fe   :  { %v414_v36 = vpop.xlane.xlu0 %413 }
 0x2ff   :  { %v407_v37 = vrot.slane %v406_v35, 2  ;;  %v415_v38 = vrot.slane %v414_v36, 4 }
 0x300   :  { %v498_v45 = vpop.xlane.xlu1 %497 }
 0x301   :  { %v416_v39 = vadd.f32 %v415_v38, %v414_v36  ;;  %v408_v40 = vadd.f32 %v407_v37, %v406_v35  ;;  %v499_v63 = vrot.slane %v498_v45, 4 }
 0x302   :  { %v425_v41 = vpop.xlane.xlu0 %424 }
 0x303   :  { %v417_v42 = vrot.slane %v416_v39, 2  ;;  %v426_v43 = vrot.slane %v425_v41, 4  ;;  %v409_v44 = vrot.slane %v408_v40, 1  ;;  %v500_v8 = vadd.f32 %v499_v63, %v498_v45 }
 0x304   :  { %v524_v57 = vpop.xlane.xlu1 %523 }
 0x305   :  { %v427_v46 = vadd.f32 %v426_v43, %v425_v41  ;;  %v410_v47 = vadd.f32 %v409_v44, %v408_v40  ;;  %v418_v49 = vadd.f32 %v417_v42, %v416_v39  ;;  %v525_v9 = vrot.slane %v524_v57, 4 }
 0x306   :  { %v440_v48 = vpop.xlane.xlu0 %439  ;;  %v501_v18 = vrot.slane %v500_v8, 2 }
 0x307   :  { %v428_v50 = vrot.slane %v427_v46, 2  ;;  %v441_v51 = vrot.slane %v440_v48, 4  ;;  %638 = vpush %v410_v47  ;;  %v419_v52 = vrot.slane %v418_v49, 1  ;;  %v526_v19 = vadd.f32 %v525_v9, %v524_v57 }
 0x308   :  { %v551_v5 = vpop.xlane.xlu1 %550  ;;  %v502_v33 = vadd.f32 %v501_v18, %v500_v8 }
 0x309   :  { %v442_v53 = vadd.f32 %v441_v51, %v440_v48  ;;  %v429_v54 = vadd.f32 %v428_v50, %v427_v46  ;;  %v420_v56 = vadd.f32 %v419_v52, %v418_v49  ;;  %v552_v20 = vrot.slane %v551_v5, 4 }
 0x30a   :  { %v450_v55 = vpop.xlane.xlu0 %449  ;;  %v527_v29 = vrot.slane %v526_v19, 2  ;;  %v503_v43 = vrot.slane %v502_v33, 1 }
 0x30b   :  { %v443_v58 = vrot.slane %v442_v53, 2  ;;  %v451_v59 = vrot.slane %v450_v55, 4  ;;  %v430_v60 = vrot.slane %v429_v54, 1  ;;  %640 = vpush %v420_v56  ;;  %v553_v30 = vadd.f32 %v552_v20, %v551_v5 }
 0x30c   :  { %v572_v22 = vpop.xlane.xlu1 %571  ;;  %v528_v44 = vadd.f32 %v527_v29, %v526_v19 }
 0x30d   :  { %v452_v61 = vadd.f32 %v451_v59, %v450_v55  ;;  %v431_v62 = vadd.f32 %v430_v60, %v429_v54  ;;  %v444_v1 = vadd.f32 %v443_v58, %v442_v53  ;;  %v573_v31 = vrot.slane %v572_v22, 4 }
 0x30e   :  { %v461_v0 = vpop.xlane.xlu0 %460  ;;  %v554_v40 = vrot.slane %v553_v30, 2  ;;  %v504_v53 = vadd.f32 %v503_v43, %v502_v33  ;;  %v529_v54 = vrot.slane %v528_v44, 1 }
 0x30f   :  { %v453_v2 = vrot.slane %v452_v61, 2  ;;  %v462_v3 = vrot.slane %v461_v0, 4  ;;  %642 = vpush %v431_v62  ;;  %v445_v4 = vrot.slane %v444_v1, 1  ;;  %v574_v41 = vadd.f32 %v573_v31, %v572_v22 }
 0x310   :  { %v555_v55 = vadd.f32 %v554_v40, %v553_v30  ;;  %v530_v63 = vadd.f32 %v529_v54, %v528_v44 }
 0x311   :  { %v463_v6 = vadd.f32 %v462_v3, %v461_v0  ;;  %v454_v7 = vadd.f32 %v453_v2, %v452_v61  ;;  %v446_v11 = vadd.f32 %v445_v4, %v444_v1  ;;  %v575_v51 = vrot.slane %v574_v41, 2 }
 0x312   :  { %v477_v10 = vpop.xlane.xlu0 %476  ;;  %v556_v0 = vrot.slane %v555_v55, 1 }
 0x313   :  { %v464_v12 = vrot.slane %v463_v6, 2  ;;  %v478_v13 = vrot.slane %v477_v10, 4  ;;  %v455_v14 = vrot.slane %v454_v7, 1  ;;  %644 = vpush %v446_v11  ;;  %v576_v62 = vadd.f32 %v575_v51, %v574_v41 }
 0x314   :  { %v557_v5 = vadd.f32 %v556_v0, %v555_v55 }
 0x315   :  { %v479_v15 = vadd.f32 %v478_v13, %v477_v10  ;;  %v456_v16 = vadd.f32 %v455_v14, %v454_v7  ;;  %v465_v17 = vadd.f32 %v464_v12, %v463_v6  ;;  %v577_v6 = vrot.slane %v576_v62, 1 }
 0x316   :  { %v487_v21 = vpop.xlane.xlu0 %486 }
 0x317   :  { %v480_v23 = vrot.slane %v479_v15, 2  ;;  %v488_v24 = vrot.slane %v487_v21, 4  ;;  %646 = vpush %v456_v16  ;;  %v466_v25 = vrot.slane %v465_v17, 1  ;;  %v578_v9 = vadd.f32 %v577_v6, %v576_v62 }
 0x319   :  { %v489_v26 = vadd.f32 %v488_v24, %v487_v21  ;;  %v467_v27 = vadd.f32 %v466_v25, %v465_v17  ;;  %v481_v28 = vadd.f32 %v480_v23, %v479_v15 }
 0x31a   :  { %v514_v32 = vpop.xlane.xlu0 %513 }
 0x31b   :  { %v490_v34 = vrot.slane %v489_v26, 2  ;;  %v515_v35 = vrot.slane %v514_v32, 4  ;;  %648 = vpush %v467_v27  ;;  %v482_v36 = vrot.slane %v481_v28, 1 }
 0x31d   :  { %v516_v37 = vadd.f32 %v515_v35, %v514_v32  ;;  %v483_v38 = vadd.f32 %v482_v36, %v481_v28  ;;  %v491_v39 = vadd.f32 %v490_v34, %v489_v26 }
 0x31e   :  { %v535_v42 = vpop.xlane.xlu0 %534 }
 0x31f   :  { %v517_v45 = vrot.slane %v516_v37, 2  ;;  %v536_v46 = vrot.slane %v535_v42, 4  ;;  %650 = vpush %v483_v38  ;;  %v492_v47 = vrot.slane %v491_v39, 1 }
 0x321   :  { %v537_v48 = vadd.f32 %v536_v46, %v535_v42  ;;  %v493_v49 = vadd.f32 %v492_v47, %v491_v39  ;;  %v518_v50 = vadd.f32 %v517_v45, %v516_v37 }
 0x322   :  { %v561_v52 = vpop.xlane.xlu0 %560 }
 0x323   :  { %v538_v56 = vrot.slane %v537_v48, 2  ;;  %v562_v57 = vrot.slane %v561_v52, 4  ;;  %652 = vpush %v493_v49  ;;  %v519_v58 = vrot.slane %v518_v50, 1 }
 0x324   :  { %654 = vpush %v504_v53 }
 0x325   :  { %v563_v59 = vadd.f32 %v562_v57, %v561_v52  ;;  %v520_v60 = vadd.f32 %v519_v58, %v518_v50  ;;  %v539_v61 = vadd.f32 %v538_v56, %v537_v48 }
 0x327   :  { %v564_v1 = vrot.slane %v563_v59, 2  ;;  %656 = vpush %v520_v60  ;;  %v540_v2 = vrot.slane %v539_v61, 1 }
 0x328   :  { %658 = vpush %v530_v63 }
 0x329   :  { %v565_v3 = vadd.f32 %v564_v1, %v563_v59  ;;  %v541_v4 = vadd.f32 %v540_v2, %v539_v61 }
 0x32b   :  { %660 = vpush %v541_v4  ;;  %v566_v7 = vrot.slane %v565_v3, 1 }
 0x32c   :  { %662 = vpush %v557_v5 }
 0x32d   :  { %v567_v8 = vadd.f32 %v566_v7, %v565_v3 }
 0x32f   :  { %664 = vpush %v567_v8 }
 0x330   :  { %666 = vpush %v578_v9 }
 0x338   :  { %s639_s14 = spop %638 }
 0x33c   :  { %s641_s15 = spop %640 }
 0x33d   :  { %s422_s29 = sadd.f32 %s641_s15, %s639_s14 }
 0x340   :  { %s643_s16 = spop %642 }
 0x341   :  { %s433_s25 = smul.f32 2.0, %s643_s16 }
 0x343   :  { %s434_s3 = ssub.f32 %s422_s29, %s433_s25 }
 0x344   :  { %s645_s17 = spop %644 }
 0x348   :  { %s647_s18 = spop %646 }
 0x349   :  { %s458_s23 = sadd.f32 %s647_s18, %s645_s17 }
 0x34c   :  { %s649_s19 = spop %648 }
 0x34d   :  { %s469_s24 = smul.f32 2.0, %s649_s19 }
 0x34f   :  { %s470_s30 = ssub.f32 %s458_s23, %s469_s24 }
 0x350   :  { %s651_s20 = spop %650 }
 0x351   :  { %s471_s7 = sadd.f32 %s470_s30, %s434_s3 }
 0x354   :  { %s653_s21 = spop %652 }
 0x355   :  { %s655_s22 = spop %654  ;;  %s495_s26 = sadd.f32 %s653_s21, %s651_s20 }
 0x356   :  { %s506_s27 = smul.f32 2.0, %s655_s22  ;;  %s725_s21 = scalar_lea.hbm %s820_s2, 16 }
 0x357   :  { %p726_p2 = scmp.ne.s32.totalorder %s820_s2, %s725_s21  ;;  %p729_p3 = scmp.lt.u32.totalorder %s725_s21, %s820_s2 }
 0x358   :  { %s657_s28 = spop %656  ;;  %s507_s1 = ssub.f32 %s495_s26, %s506_s27 }
 0x359   :  { %s659_s0 = spop %658  ;;  %p731_p4 = pnand %p729_p3, %p726_p2 }
 0x35a   :  { %s532_s5 = sadd.f32 %s659_s0, %s657_s28 }
 0x35b   :  { %s508_s11 = sadd.f32 %s507_s1, %s471_s7 }
 0x35c   :  { %s661_s4 = spop %660 }
 0x35d   :  { %s543_s6 = smul.f32 2.0, %s661_s4  ;;  %s663_s9 = spop %662 }
 0x35f   :  { %s544_s8 = ssub.f32 %s532_s5, %s543_s6 }
 0x360   :  { %s665_s10 = spop %664 }
 0x361   :  { %s667_s12 = spop %666  ;;  %s569_s13 = sadd.f32 %s665_s10, %s663_s9 }
 0x362   :  { %s580_s17 = smul.f32 2.0, %s667_s12  ;;  %s545_s16 = sadd.f32 %s544_s8, %s508_s11 }
 0x364   :  { %s581_s18 = ssub.f32 %s569_s13, %s580_s17 }
 0x366   :  { %s582_s19 = sadd.f32 %s581_s18, %s545_s16 }
 0x368   :  { %s585_s20 = smul.f32 0.015625, %s582_s19 }
 0x36a   :  { %587 = sst [smem:[#allocation7]] %s585_s20 }
 0x36b   :  { %734 = shalt.err (!%p731_p4)
}
 0x36c   :  { %s745_s26 = smov [#allocation7]  }
 0x36d   :  { %595 = dma.smem_to_hbm %s745_s26, 16, %s820_s2, [#allocation4]  }
 0x36e   :  { %739 = dma.done.wait [#allocation4], 16  }
 0x36f   :  { %740 = vsyncadd [#allocation4], 4294967280 }
 0x370   :  { %599 = sfence }
 0x371   :  { %600 = vsyncpa [#allocation3], 1 }
 0x372   :  { %601 = vsyncpa [#allocation6], 1 }
 0x373   :  { %602 = vsyncpa [#allocation4], 1 }

</bundles_post_ra>
